<compile_context>
chip_gen: v6e
topology: v6e:2x2x1
jax: 0.10.0
libtpu: 0.0.40
codegen_flags: <defaults>
</compile_context>

<pallas_src>
import jax
import jax.numpy as jnp
from jax.experimental import pallas as pl
from jax.experimental.pallas import tpu as pltpu

SUBLANE = 8       # f32 sublane count
TILE_MAX = 512    # max batch rows per grid step


def _round_up(n, m):
    return ((n + m - 1) // m) * m


def qnetwork_kernel(x_ref, w1_ref, b1_ref, w2_ref, b2_ref, w3_ref, b3_ref, o_ref):
    # fc1: bf16 operands -> MXU, f32 accumulation; bias + ReLU in f32 (VPU).
    x = x_ref[...].astype(jnp.bfloat16)
    h1 = jnp.dot(x, w1_ref[...], preferred_element_type=jnp.float32)
    h1 = jnp.maximum(h1 + b1_ref[...], 0.0)

    # fc2 + ReLU
    h2 = jnp.dot(h1.astype(jnp.bfloat16), w2_ref[...],
                 preferred_element_type=jnp.float32)
    h2 = jnp.maximum(h2 + b2_ref[...], 0.0)

    # fc3 (no activation)
    out = jnp.dot(h2.astype(jnp.bfloat16), w3_ref[...],
                  preferred_element_type=jnp.float32)
    o_ref[...] = (out + b3_ref[...]).astype(o_ref.dtype)


def init_qnetwork_params(key, input_size, action_size, hidden=128):
    """PyTorch-style nn.Linear init (uniform +-1/sqrt(fan_in)), f32.

    Weights are stored (fan_in, fan_out) so the kernel computes x @ W + b
    (equivalent to torch's x @ W.T + b).
    """
    keys = jax.random.split(key, 6)

    def linear(kw, kb, fan_in, fan_out):
        bound = 1.0 / jnp.sqrt(jnp.float32(fan_in))
        w = jax.random.uniform(kw, (fan_in, fan_out), jnp.float32, -bound, bound)
        b = jax.random.uniform(kb, (1, fan_out), jnp.float32, -bound, bound)
        return w, b

    w1, b1 = linear(keys[0], keys[1], input_size, hidden)
    w2, b2 = linear(keys[2], keys[3], hidden, hidden)
    w3, b3 = linear(keys[4], keys[5], hidden, action_size)
    return {"w1": w1, "b1": b1, "w2": w2, "b2": b2, "w3": w3, "b3": b3}


def prepare_params(params):
    """One-time prep: cast matmul operands to bf16 (no padding needed).
    Biases stay f32 for the f32 VPU epilogue."""
    return {
        "w1": params["w1"].astype(jnp.bfloat16),
        "b1": params["b1"],
        "w2": params["w2"].astype(jnp.bfloat16),
        "b2": params["b2"],
        "w3": params["w3"].astype(jnp.bfloat16),
        "b3": params["b3"],
    }


def _choose_tile_b(B):
    """Batch tile: multiple of 8 (or == B for tiny B), capped at TILE_MAX rows,
    sized so per-call padding waste is bounded by one tile. For B >= 64 force
    >= 2 grid steps so both v7x TensorCores are used."""
    if B <= SUBLANE:
        return B  # block dim equals full array dim -> legal
    n_steps = max(pl.cdiv(B, TILE_MAX), 1)
    if B >= 64 and n_steps < 2:
        n_steps = 2
    tile_b = _round_up(pl.cdiv(B, n_steps), SUBLANE)
    return min(tile_b, _round_up(B, SUBLANE))


def qnetwork_forward(x, prepared):
    """x: (B, input_size) float32. prepared: output of prepare_params()."""
    w1, b1, w2, b2, w3, b3 = (prepared["w1"], prepared["b1"], prepared["w2"],
                              prepared["b2"], prepared["w3"], prepared["b3"])

    B, input_size = x.shape
    hidden = w1.shape[1]
    action_size = w3.shape[1]

    tile_b = _choose_tile_b(B)
    grid = (pl.cdiv(B, tile_b),)
    rows = grid[0] * tile_b  # rows actually pushed through the MXU

    flops = 2 * rows * (input_size * hidden + hidden * hidden + hidden * action_size)
    bytes_accessed = (
        x.size * 4
        + w1.size * 2 + w2.size * 2 + w3.size * 2
        + b1.size * 4 + b2.size * 4 + b3.size * 4
        + B * action_size * 4)

    # Weight/bias specs use a constant index_map -> VMEM-resident across steps.
    # (Leaving the default double-buffering on them: ~100 KB, not worth risking
    #  a pipeline_mode tweak for.)
    out = pl.pallas_call(
        qnetwork_kernel,
        out_shape=jax.ShapeDtypeStruct((B, action_size), jnp.float32),
        grid=grid,
        in_specs=[
            pl.BlockSpec((tile_b, input_size), lambda i: (i, 0)),   # x tile
            pl.BlockSpec((input_size, hidden), lambda i: (0, 0)),   # w1 (resident)
            pl.BlockSpec((1, hidden), lambda i: (0, 0)),            # b1
            pl.BlockSpec((hidden, hidden), lambda i: (0, 0)),       # w2
            pl.BlockSpec((1, hidden), lambda i: (0, 0)),            # b2
            pl.BlockSpec((hidden, action_size), lambda i: (0, 0)),  # w3
            pl.BlockSpec((1, action_size), lambda i: (0, 0)),       # b3
        ],
        out_specs=pl.BlockSpec((tile_b, action_size), lambda i: (i, 0)),
        compiler_params=pltpu.CompilerParams(
            dimension_semantics=("parallel",),
            vmem_limit_bytes=16 << 20,
        ),
        cost_estimate=pl.CostEstimate(
            flops=flops, transcendentals=0, bytes_accessed=bytes_accessed),
    )(x, w1, b1, w2, b2, w3, b3)

    return out


def qnetwork_ref(x, params):
    """Pure-JAX f32 reference implementing the exact PyTorch forward."""
    h1 = jnp.maximum(x @ params["w1"] + params["b1"], 0.0)
    h2 = jnp.maximum(h1 @ params["w2"] + params["b2"], 0.0)
    return h2 @ params["w3"] + params["b3"]


if __name__ == "__main__":
    key = jax.random.PRNGKey(0)
    k_params, k_x = jax.random.split(key)

    batch = 8
    input_size = 64     # state vector size
    action_size = 16    # number of discrete actions

    params = init_qnetwork_params(k_params, input_size, action_size)
    prepared = prepare_params(params)
    x = jax.random.normal(k_x, (batch, input_size), jnp.float32)

    out = qnetwork_forward(x, prepared)
    out = jax.block_until_ready(out)

    ref = qnetwork_ref(x, params)
    assert out.shape == (batch, action_size), out.shape
    # bf16 matmul operands with f32 accumulation -> tolerance vs pure-f32 reference.
    assert jnp.allclose(out, ref, atol=3e-2, rtol=3e-2), "mismatch vs reference"

    print("KERNEL_OK")
</pallas_src>

<mosaic_0001>
module attributes {stable_mosaic.version = 11 : i64} {
  func.func @qnetwork_kernel(%arg0: i32, %arg1: memref<8x64xf32, #tpu.memory_space<vmem>>, %arg2: memref<64x128xbf16, #tpu.memory_space<vmem>>, %arg3: memref<1x128xf32, #tpu.memory_space<vmem>>, %arg4: memref<128x128xbf16, #tpu.memory_space<vmem>>, %arg5: memref<1x128xf32, #tpu.memory_space<vmem>>, %arg6: memref<128x16xbf16, #tpu.memory_space<vmem>>, %arg7: memref<1x16xf32, #tpu.memory_space<vmem>>, %arg8: memref<8x16xf32, #tpu.memory_space<vmem>>) attributes {dimension_semantics = [#tpu.dimension_semantics<parallel>], iteration_bounds = array<i64: 1>, scalar_prefetch = 0 : i64, scratch_operands = 0 : i64, tpu.core_type = #tpu.core_type<tc>, window_params = [{transform_indices = @transform_0, window_bounds = array<i64: 8, 64>}, {pipeline_mode = #tpu.pipeline_mode<synchronous>, transform_indices = @transform_1, window_bounds = array<i64: 64, 128>}, {pipeline_mode = #tpu.pipeline_mode<synchronous>, transform_indices = @transform_2, window_bounds = array<i64: 1, 128>}, {pipeline_mode = #tpu.pipeline_mode<synchronous>, transform_indices = @transform_3, window_bounds = array<i64: 128, 128>}, {pipeline_mode = #tpu.pipeline_mode<synchronous>, transform_indices = @transform_4, window_bounds = array<i64: 1, 128>}, {pipeline_mode = #tpu.pipeline_mode<synchronous>, transform_indices = @transform_5, window_bounds = array<i64: 128, 16>}, {pipeline_mode = #tpu.pipeline_mode<synchronous>, transform_indices = @transform_6, window_bounds = array<i64: 1, 16>}, {transform_indices = @transform_7, window_bounds = array<i64: 8, 16>}]} {
    %c0 = arith.constant 0 : index
    %c0_0 = arith.constant 0 : index
    %0 = vector.load %arg1[%c0, %c0_0] : memref<8x64xf32, #tpu.memory_space<vmem>>, vector<8x64xf32>
    %1 = arith.truncf %0 : vector<8x64xf32> to vector<8x64xbf16>
    %c0_1 = arith.constant 0 : index
    %c0_2 = arith.constant 0 : index
    %2 = vector.load %arg2[%c0_1, %c0_2] : memref<64x128xbf16, #tpu.memory_space<vmem>>, vector<64x128xbf16>
    %cst = arith.constant dense<0.000000e+00> : vector<8x128xf32>
    %3 = tpu.matmul %1, %2, %cst {dimension_numbers = #tpu.dot_dimension_numbers<[1], [0], [0], [1], [0, 0, 1, 1], [], []>} : vector<8x64xbf16>, vector<64x128xbf16>, vector<8x128xf32> -> vector<8x128xf32>
    %c0_3 = arith.constant 0 : index
    %c0_4 = arith.constant 0 : index
    %4 = vector.load %arg3[%c0_3, %c0_4] : memref<1x128xf32, #tpu.memory_space<vmem>>, vector<1x128xf32>
    %5 = vector.broadcast %4 : vector<1x128xf32> to vector<8x128xf32>
    %6 = arith.addf %3, %5 : vector<8x128xf32>
    %cst_5 = arith.constant 0.000000e+00 : f32
    %7 = vector.broadcast %cst_5 : f32 to vector<8x128xf32>
    %8 = arith.maximumf %6, %7 : vector<8x128xf32>
    %9 = arith.truncf %8 : vector<8x128xf32> to vector<8x128xbf16>
    %c0_6 = arith.constant 0 : index
    %c0_7 = arith.constant 0 : index
    %10 = vector.load %arg4[%c0_6, %c0_7] : memref<128x128xbf16, #tpu.memory_space<vmem>>, vector<128x128xbf16>
    %cst_8 = arith.constant dense<0.000000e+00> : vector<8x128xf32>
    %11 = tpu.matmul %9, %10, %cst_8 {dimension_numbers = #tpu.dot_dimension_numbers<[1], [0], [0], [1], [0, 0, 1, 1], [], []>} : vector<8x128xbf16>, vector<128x128xbf16>, vector<8x128xf32> -> vector<8x128xf32>
    %c0_9 = arith.constant 0 : index
    %c0_10 = arith.constant 0 : index
    %12 = vector.load %arg5[%c0_9, %c0_10] : memref<1x128xf32, #tpu.memory_space<vmem>>, vector<1x128xf32>
    %13 = vector.broadcast %12 : vector<1x128xf32> to vector<8x128xf32>
    %14 = arith.addf %11, %13 : vector<8x128xf32>
    %cst_11 = arith.constant 0.000000e+00 : f32
    %15 = vector.broadcast %cst_11 : f32 to vector<8x128xf32>
    %16 = arith.maximumf %14, %15 : vector<8x128xf32>
    %17 = arith.truncf %16 : vector<8x128xf32> to vector<8x128xbf16>
    %c0_12 = arith.constant 0 : index
    %c0_13 = arith.constant 0 : index
    %18 = vector.load %arg6[%c0_12, %c0_13] : memref<128x16xbf16, #tpu.memory_space<vmem>>, vector<128x16xbf16>
    %cst_14 = arith.constant dense<0.000000e+00> : vector<8x16xf32>
    %19 = tpu.matmul %17, %18, %cst_14 {dimension_numbers = #tpu.dot_dimension_numbers<[1], [0], [0], [1], [0, 0, 1, 1], [], []>} : vector<8x128xbf16>, vector<128x16xbf16>, vector<8x16xf32> -> vector<8x16xf32>
    %c0_15 = arith.constant 0 : index
    %c0_16 = arith.constant 0 : index
    %20 = vector.load %arg7[%c0_15, %c0_16] : memref<1x16xf32, #tpu.memory_space<vmem>>, vector<1x16xf32>
    %21 = vector.broadcast %20 : vector<1x16xf32> to vector<8x16xf32>
    %22 = arith.addf %19, %21 : vector<8x16xf32>
    %c0_17 = arith.constant 0 : index
    %c0_18 = arith.constant 0 : index
    %23 = vector.load %arg8[%c0_17, %c0_18] : memref<8x16xf32, #tpu.memory_space<vmem>>, vector<8x16xf32>
    tpu.vector_store %arg8[%c0_17, %c0_18], %22 {strides = array<i32>} : memref<8x16xf32, #tpu.memory_space<vmem>>, vector<8x16xf32>,
    return
  }
  func.func @transform_0(%arg0: i32) -> (i32, i32) {
    %c0_i32 = arith.constant 0 : i32
    %c0_i32_0 = arith.constant 0 : i32
    return %arg0, %c0_i32 : i32, i32
  }
  func.func @transform_1(%arg0: i32) -> (i32, i32) {
    %c0_i32 = arith.constant 0 : i32
    %c0_i32_0 = arith.constant 0 : i32
    %c0_i32_1 = arith.constant 0 : i32
    return %c0_i32, %c0_i32_0 : i32, i32
  }
  func.func @transform_2(%arg0: i32) -> (i32, i32) {
    %c0_i32 = arith.constant 0 : i32
    %c0_i32_0 = arith.constant 0 : i32
    %c0_i32_1 = arith.constant 0 : i32
    return %c0_i32, %c0_i32_0 : i32, i32
  }
  func.func @transform_3(%arg0: i32) -> (i32, i32) {
    %c0_i32 = arith.constant 0 : i32
    %c0_i32_0 = arith.constant 0 : i32
    %c0_i32_1 = arith.constant 0 : i32
    return %c0_i32, %c0_i32_0 : i32, i32
  }
  func.func @transform_4(%arg0: i32) -> (i32, i32) {
    %c0_i32 = arith.constant 0 : i32
    %c0_i32_0 = arith.constant 0 : i32
    %c0_i32_1 = arith.constant 0 : i32
    return %c0_i32, %c0_i32_0 : i32, i32
  }
  func.func @transform_5(%arg0: i32) -> (i32, i32) {
    %c0_i32 = arith.constant 0 : i32
    %c0_i32_0 = arith.constant 0 : i32
    %c0_i32_1 = arith.constant 0 : i32
    return %c0_i32, %c0_i32_0 : i32, i32
  }
  func.func @transform_6(%arg0: i32) -> (i32, i32) {
    %c0_i32 = arith.constant 0 : i32
    %c0_i32_0 = arith.constant 0 : i32
    %c0_i32_1 = arith.constant 0 : i32
    return %c0_i32, %c0_i32_0 : i32, i32
  }
  func.func @transform_7(%arg0: i32) -> (i32, i32) {
    %c0_i32 = arith.constant 0 : i32
    %c0_i32_0 = arith.constant 0 : i32
    return %arg0, %c0_i32 : i32, i32
  }
}

</mosaic_0001>

<bundles_post_ra>
// kernel: tpu_custom_call.1
= control target key start
LH: loop header
LB: loop body
LE: loop exit
PB: predicated region body
PF: predicated region fallthrough
CT: control target
= control target key end

     0   :  { %12 = vsyncpa [#allocation3], 0  ;;  %s714_s0 = inlined_call_operand.vmem [shape: f32[8,64], index: 0, kind: input, shape index: {}]   ;;  %s715_s1 = inlined_call_operand.hbm [shape: bf16[64,128], index: 1, kind: input, shape index: {}]   ;;  %s716_s2 = inlined_call_operand.vmem [shape: f32[1,128], index: 2, kind: input, shape index: {}]   ;;  %s717_s3 = inlined_call_operand.vmem [shape: bf16[128,128], index: 3, kind: input, shape index: {}]   ;;  %s718_s4 = inlined_call_operand.hbm [shape: f32[1,128], index: 4, kind: input, shape index: {}]   ;;  %s719_s5 = inlined_call_operand.vmem [shape: bf16[128,16], index: 5, kind: input, shape index: {}]   ;;  %s720_s6 = inlined_call_operand.vmem [shape: f32[1,16], index: 6, kind: input, shape index: {}]   ;;  %s721_s7 = inlined_call_operand.hbm [shape: f32[8,16], index: 7, kind: output, shape index: {}]  }
   0x1   :  { %13 = vsyncpa [#allocation6], 0 }
   0x2   :  { %14 = vsyncpa [#allocation4], 0  ;;  %s575_s24 = smov [#allocation2]  }
   0x3   :  { %s22_s25 = sshll.u32 %s575_s24, 4  ;;  %s23_s25 = int_to_ptr.vmem [resolvable:$true] %s22_s25 }
   0x4   :  { %s517_s26 = scalar_lea.vmem %s23_s25, 512  ;;  %p522_p1 = scmp.lt.s32.totalorder %s23_s25, %s23_s25 }
   0x5   :  { %p518_p0 = scmp.ne.s32.totalorder %s23_s25, %s517_s26  ;;  %p523_p2 = scmp.lt.s32.totalorder %s517_s26, %s517_s26 }
   0x7   :  { %p524_p3 = por %p523_p2, %p522_p1 }
   0x9   :  { %p525_p4 = pnand %p524_p3, %p518_p0 }
   0xb   :  { %528 = shalt.err (!%p525_p4)
}
   0xc   :  { %s576_s27 = smov 64   ;;  %s577_s28 = smov 4  }
   0xd   :  { %28 = dma.hbm_to_vmem [thread:$0]  %s715_s1, 512, %s23_s25, [#allocation3], %s576_s27, %s576_s27, %s577_s28  }
   0xe   :  { %s578_s8 = smov [#allocation5]  }
   0xf   :  { %s39_s9 = sshll.u32 %s578_s8, 4  ;;  %s40_s9 = int_to_ptr.vmem [resolvable:$true] %s39_s9 }
  0x10   :  { %s537_s10 = scalar_lea.vmem %s40_s9, 16  ;;  %s541_s11 = scalar_lea.vmem %s40_s9, 32 }
  0x11   :  { %p538_p5 = scmp.ne.s32.totalorder %s40_s9, %s537_s10  ;;  %p542_p6 = scmp.lt.s32.totalorder %s40_s9, %s40_s9 }
  0x12   :  { %p543_p7 = scmp.lt.s32.totalorder %s541_s11, %s537_s10 }
  0x14   :  { %p544_p8 = por %p543_p7, %p542_p6 }
  0x16   :  { %p545_p9 = pnand %p544_p8, %p538_p5 }
  0x18   :  { %548 = shalt.err (!%p545_p9)
}
  0x19   :  { %42 = dma.hbm_to_vmem [thread:$0]  %s718_s4, 16, %s40_s9, [#allocation6]  }
  0x1a   :  { %569 = dma.done.wait [#allocation3], 512  }
  0x1b   :  { %570 = vsyncadd [#allocation3], 4294966784 }
  0x1c   :  { %571 = dma.done.wait [#allocation6], 16  }
  0x1d   :  { %572 = vsyncadd [#allocation6], 4294967280  ;;  %v579_v0 = vmov 0.0   ;;  %vm580_vm0 = vmmov 0   ;;  %v489_v1 = vld [vmem:[#allocation2 + $0x18] sm:$0xff]   ;;  %v490_v2 = vld [vmem:[#allocation2 + $0x10] sm:$0xff]  }
  0x1e   :  { %430 = vmatprep.subr.bf16.mxu0 %v579_v0  ;;  %438 = vmatprep.mubr.msk.bf16.mxu0 %vm580_vm0, %v579_v0  ;;  %v493_v3 = vld [vmem:[%s717_s3 + $0x38] sm:$0xff]   ;;  %v491_v4 = vld [vmem:[#allocation2 + $0x8] sm:$0xff]   ;;  %v494_v5 = vld [vmem:[%s717_s3 + $0x30] sm:$0xff]   ;;  %vm95_vm1 = vcmask 523264   ;;  %vm365_vm2 = vcmask 130048  }
  0x1f   :  { %442 = vmatprep.subr.bf16.mxu1 %v579_v0  ;;  %458 = vmatprep.mubr.msk.bf16.mxu1 %vm580_vm0, %v579_v0  ;;  %v492_v6 = vld [vmem:[#allocation2] sm:$0xff]   ;;  %v495_v8 = vld [vmem:[%s717_s3 + $0x28] sm:$0xff]   ;;  %v497_v11 = vld [vmem:[%s717_s3 + $0x18] sm:$0xff]  }
  0x20   :  { %431 = vmatpush3.bf16.msra.mxu0 %v489_v1  ;;  %443 = vmatpush3.bf16.msra.mxu1 %v493_v3  ;;  %v54_v7 = vld [vmem:[%s714_s0] sm:$0xff]  ;;  %v498_v12 = vld [vmem:[%s717_s3 + $0x10] sm:$0xff]   ;;  %v499_v13 = vld [vmem:[%s717_s3 + $0x8] sm:$0xff]   ;;  %s581_s0 = smov [#allocation7]  }
  0x21   :  { %432 = vmatprep.subr.bf16.mxu0 %v579_v0  ;;  %444 = vmatprep.subr.bf16.mxu1 %v579_v0  ;;  %v55_v9 = vpack.c.bf16 %v54_v7, %v54_v7  ;;  %v496_v10 = vld [vmem:[%s717_s3 + $0x20] sm:$0xff]   ;;  %v501_v15 = vld [vmem:[%s719_s5 + $0x38] sm:$0xff]   ;;  %v502_v16 = vld [vmem:[%s719_s5 + $0x30] sm:$0xff]   ;;  %s373_s22 = sshll.u32 %s581_s0, 4  ;;  %s374_s22 = int_to_ptr.vmem [resolvable:$true] %s373_s22 }
  0x22   :  { %v500_v14 = vld [vmem:[%s717_s3] sm:$0xff]   ;;  %v503_v17 = vld [vmem:[%s719_s5 + $0x28] sm:$0xff]   ;;  %v505_v19 = vld [vmem:[%s719_s5 + $0x18] sm:$0xff]   ;;  %p554_p11 = scmp.lt.s32.totalorder %s374_s22, %s374_s22 }
  0x23   :  { %v504_v18 = vld [vmem:[%s719_s5 + $0x20] sm:$0xff]   ;;  %v506_v20 = vld [vmem:[%s719_s5 + $0x10] sm:$0xff]   ;;  %v507_v29 = vld [vmem:[%s719_s5 + $0x8] sm:$0xff]  }
  0x24   :  { %433 = vmatpush3.bf16.msra.mxu0 %v490_v2  ;;  %445 = vmatpush3.bf16.msra.mxu1 %v494_v5  ;;  %v383_v21 = vld [vmem:[%s716_s2] ss:$0 sm:$0xff] }
  0x25   :  { %434 = vmatprep.subr.bf16.mxu0 %v579_v0  ;;  %446 = vmatprep.subr.bf16.mxu1 %v579_v0  ;;  %v508_v30 = vld [vmem:[%s719_s5] sm:$0xff]   ;;  %s549_s5 = scalar_lea.vmem %s374_s22, 128 }
  0x26   :  { %v389_v31 = vld [vmem:[#allocation5] ss:$0 sm:$0xff]  ;;  %p550_p10 = scmp.ne.s32.totalorder %s374_s22, %s549_s5  ;;  %p555_p12 = scmp.lt.s32.totalorder %s549_s5, %s549_s5 }
  0x27   :  { %v398_v39 = vld [vmem:[%s720_s6] ss:$0 sm:$0xff] }
  0x28   :  { %435 = vmatpush3.bf16.msra.mxu0 %v491_v4  ;;  %447 = vmatpush3.bf16.msra.mxu1 %v495_v8  ;;  %p556_p13 = por %p555_p12, %p554_p11 }
  0x29   :  { %436 = vmatprep.subr.bf16.mxu0 %v579_v0  ;;  %448 = vmatprep.subr.bf16.mxu1 %v579_v0 }
  0x2a   :  { %p557_p0 = pnand %p556_p13, %p550_p10 }
  0x2c   :  { %437 = vmatpush3.bf16.msra.mxu0 %v492_v6  ;;  %449 = vmatpush3.bf16.msra.mxu1 %v496_v10 }
  0x2d   :  { %462 = vmatprep.subr.bf16.mxu0 %v579_v0  ;;  %450 = vmatprep.subr.bf16.mxu1 %v579_v0 }
  0x2f   :  { %439 = vmatmul.mubr.msk.bf16.vlgmr.msra.gmra.mxu0 %vm95_vm1, %v55_v9 }
  0x30   :  { %478 = vmatprep.mubr.msk.bf16.mxu0 %vm580_vm0, %v579_v0  ;;  %451 = vmatpush3.bf16.msra.mxu1 %v497_v11 }
  0x31   :  { %452 = vmatprep.subr.bf16.mxu1 %v579_v0  ;;  %463 = vmatpush3.bf16.msra.mxu0 %v501_v15 }
  0x32   :  { %464 = vmatprep.subr.bf16.mxu0 %v579_v0 }
  0x34   :  { %453 = vmatpush3.bf16.msra.mxu1 %v498_v12 }
  0x35   :  { %454 = vmatprep.subr.bf16.mxu1 %v579_v0  ;;  %465 = vmatpush3.bf16.msra.mxu0 %v502_v16 }
  0x36   :  { %466 = vmatprep.subr.bf16.mxu0 %v579_v0 }
  0x38   :  { %455 = vmatpush3.bf16.msra.mxu1 %v499_v13 }
  0x39   :  { %456 = vmatprep.subr.bf16.mxu1 %v579_v0  ;;  %467 = vmatpush3.bf16.msra.mxu0 %v503_v17 }
  0x3a   :  { %468 = vmatprep.subr.bf16.mxu0 %v579_v0 }
  0x3c   :  { %457 = vmatpush3.bf16.msra.mxu1 %v500_v14 }
  0x3d   :  { %469 = vmatpush3.bf16.msra.mxu0 %v504_v18 }
  0x3e   :  { %470 = vmatprep.subr.bf16.mxu0 %v579_v0 }
  0x41   :  { %471 = vmatpush3.bf16.msra.mxu0 %v505_v19 }
  0x42   :  { %472 = vmatprep.subr.bf16.mxu0 %v579_v0 }
  0x45   :  { %473 = vmatpush3.bf16.msra.mxu0 %v506_v20 }
  0x46   :  { %474 = vmatprep.subr.bf16.mxu0 %v579_v0 }
  0x49   :  { %475 = vmatpush3.bf16.msra.mxu0 %v507_v29 }
  0x4a   :  { %476 = vmatprep.subr.bf16.mxu0 %v579_v0 }
  0x4d   :  { %477 = vmatpush3.bf16.msra.mxu0 %v508_v30 }
  0xef   :  { %v133_v22 = vpop.f32.mrf.mxu0 }
  0xf0   :  { %v134_v23 = vadd.f32 %v383_v21, %v133_v22 }
  0xf1   :  { %v440_v24 = vpop.f32.mrf.mxu0 }
  0xf2   :  { %v139_v25 = vmax.f32 %v134_v23, 0.0 }
  0xf3   :  { %v136_v26 = vpop.f32.mrf.mxu0 }
  0xf4   :  { %v140_v27 = vpack.c.bf16 %v139_v25, %v139_v25 }
  0xf5   :  { %v441_v28 = vpop.f32.mrf.mxu0 }
  0xf6   :  { %459 = vmatmul.mubr.bf16.vlgmr.msra.gmra.mxu1 %v140_v27 }
 0x1b6   :  { %v246_v32 = vpop.f32.mrf.mxu1 }
 0x1b7   :  { %v247_v33 = vadd.f32 %v389_v31, %v246_v32 }
 0x1b8   :  { %v460_v34 = vpop.f32.mrf.mxu1 }
 0x1b9   :  { %v252_v35 = vmax.f32 %v247_v33, 0.0 }
 0x1ba   :  { %v249_v36 = vpop.f32.mrf.mxu1 }
 0x1bb   :  { %v253_v37 = vpack.c.bf16 %v252_v35, %v252_v35 }
 0x1bc   :  { %v461_v38 = vpop.f32.mrf.mxu1 }
 0x1bd   :  { %479 = vmatmul.mubr.bf16.vlgmr.msra.gmra.mxu0 %v253_v37 }
 0x27d   :  { %v359_v40 = vpop.f32.mrf.mxu0 }
 0x27e   :  { %v360_v41 = vadd.f32 %v398_v39, %v359_v40 }
 0x27f   :  { %v480_v42 = vpop.f32.mrf.mxu0 }
 0x280   :  { %366 = vst.msk [vmem:[#allocation7] sm:$0xff] %vm365_vm2, %v360_v41 }
 0x281   :  { %v362_v43 = vpop.f32.mrf.mxu0 }
 0x282   :  { %560 = shalt.err (!%p557_p0)
}
 0x283   :  { %376 = dma.vmem_to_hbm [thread:$0]  %s374_s22, 128, %s721_s7, [#allocation4]   ;;  %v481_v44 = vpop.f32.mrf.mxu0 }
 0x284   :  { %573 = dma.done.wait [#allocation4], 128  }
 0x285   :  { %574 = vsyncadd [#allocation4], 4294967168 }
 0x286   :  { %380 = vsyncpa [#allocation3], 1 }
 0x287   :  { %381 = vsyncpa [#allocation6], 1 }
 0x288   :  { %382 = vsyncpa [#allocation4], 1 }

</bundles_post_ra>
